<compile_context>
chip_gen: v5e
topology: v5e:2x2
jax: 0.10.0
libtpu: 0.0.40
codegen_flags: <defaults>
</compile_context>

<pallas_src>
import functools

import jax
import jax.numpy as jnp
from jax.experimental import pallas as pl
from jax.experimental.pallas import tpu as pltpu

EPS = 1e-5


# ----------------------------------------------------------------------------
# Kernels
# ----------------------------------------------------------------------------
def _adain_row_kernel(x_ref, style_ref, out_ref):
    """Full-row tile: single-pass sum/sumsq reduction + fused style affine.

    x_ref / out_ref : (block_r, HW) in the content's native dtype
    style_ref       : (block_r, 2) f32, columns = [style_std, style_mean]
    """
    x = x_ref[...].astype(jnp.float32)
    hw = x.shape[-1]

    s = jnp.sum(x, axis=-1, keepdims=True)
    ss = jnp.sum(x * x, axis=-1, keepdims=True)
    mean = s * jnp.float32(1.0 / hw)
    # unbiased variance (matches torch .var(dim=2)); clamp against cancellation
    var = jnp.maximum(ss - s * mean, 0.0) * jnp.float32(1.0 / (hw - 1)) + jnp.float32(EPS)
    inv_std = jax.lax.rsqrt(var)

    style = style_ref[...]                       # (block_r, 2)
    scale = inv_std * style[:, 0:1]              # inv_std * style_std
    shift = style[:, 1:2] - mean * scale         # style_mean - mean * scale
    out_ref[...] = (x * scale + shift).astype(out_ref.dtype)


def _stats_kernel(x_ref, mean_ref, istd_ref, sum_ref, ssq_ref, *, hw):
    """Chunked-HW stats pass: accumulate per-row sum / sumsq over HW chunks."""
    k = pl.program_id(1)

    @pl.when(k == 0)
    def _():
        sum_ref[...] = jnp.zeros_like(sum_ref)
        ssq_ref[...] = jnp.zeros_like(ssq_ref)

    x = x_ref[...].astype(jnp.float32)
    chunk = x.shape[-1]
    col = k * chunk + jax.lax.broadcasted_iota(jnp.int32, x.shape, 1)
    x = jnp.where(col < hw, x, jnp.float32(0.0))  # mask the ragged tail chunk

    sum_ref[...] += jnp.sum(x, axis=-1, keepdims=True)
    ssq_ref[...] += jnp.sum(x * x, axis=-1, keepdims=True)

    @pl.when(k == pl.num_programs(1) - 1)
    def _():
        s = sum_ref[...]
        mean = s * jnp.float32(1.0 / hw)
        var = jnp.maximum(ssq_ref[...] - s * mean, 0.0) * jnp.float32(1.0 / (hw - 1)) \
            + jnp.float32(EPS)
        mean_ref[...] = mean
        istd_ref[...] = jax.lax.rsqrt(var)


def _apply_kernel(x_ref, cs_ref, out_ref):
    """Chunked-HW apply pass: out = x * scale + shift."""
    x = x_ref[...].astype(jnp.float32)
    cs = cs_ref[...]                              # (block_r, 2): [scale, shift]
    out_ref[...] = (x * cs[:, 0:1] + cs[:, 1:2]).astype(out_ref.dtype)


# ----------------------------------------------------------------------------
# Tiling / VMEM planning
# ----------------------------------------------------------------------------
def _ceil_div(a, b):
    return -(-a // b)


def _sublane(dtype):
    itemsize = jnp.dtype(dtype).itemsize
    if itemsize >= 4:
        return 8
    if itemsize == 2:
        return 16
    return 32


def _vmem_capacity_bytes():
    try:
        info = pltpu.get_tpu_info()
        cap = getattr(info, "vmem_capacity_bytes", None)
        if cap:
            return int(cap)
    except Exception:
        pass
    return 64 * 1024 * 1024  # conservative (v7x per-TC)


def _vmem_plan():
    cap = _vmem_capacity_bytes()
    vmem_limit = min((cap * 3) // 4, 96 * 1024 * 1024)   # 48 MiB on v7x, 96 MiB on v5e/v6e
    # Per pipelined buffer (native dtype). /12 leaves headroom for double-buffered
    # in+out tiles plus the in-kernel f32 upcast/intermediates.
    tile_budget = max(256 * 1024, vmem_limit // 12)
    return int(vmem_limit), int(tile_budget)


def _pick_block_r(r, hw, itemsize, sub, tile_budget, min_steps=8):
    """Largest sublane-aligned row block within the VMEM budget, capped so the
    grid keeps ~min_steps steps (megacore sharding + pipelining)."""
    if r <= sub:
        return r  # single block; full first dim is always legal
    row_bytes = max(1, hw * itemsize)
    budget_rows = max(sub, (tile_budget // row_bytes) // sub * sub)
    steps_rows = max(sub, (r // min_steps) // sub * sub)
    block_r = max(sub, min(budget_rows, steps_rows, (r // sub) * sub))
    return block_r


def _pick_chunk(hw, itemsize, sub, tile_budget):
    block_r = sub
    max_chunk = max(128, (tile_budget // (block_r * itemsize)) // 128 * 128)
    chunk = min(max_chunk, _ceil_div(hw, 128) * 128)
    return block_r, chunk


# ----------------------------------------------------------------------------
# pallas_call wrappers
# ----------------------------------------------------------------------------
def _adain_single(x2, style2, out_dtype, block_r, vmem_limit):
    r, hw = x2.shape
    grid = (_ceil_div(r, block_r),)
    return pl.pallas_call(
        _adain_row_kernel,
        out_shape=jax.ShapeDtypeStruct((r, hw), out_dtype),
        grid_spec=pltpu.PrefetchScalarGridSpec(
            num_scalar_prefetch=0,
            grid=grid,
            in_specs=[
                pl.BlockSpec((block_r, hw), lambda i: (i, 0)),
                pl.BlockSpec((block_r, 2), lambda i: (i, 0)),
            ],
            out_specs=pl.BlockSpec((block_r, hw), lambda i: (i, 0)),
        ),
        compiler_params=pltpu.CompilerParams(
            dimension_semantics=("parallel",),
            vmem_limit_bytes=vmem_limit,
        ),
    )(x2, style2)


def _adain_chunked(x2, sstd2, smean2, out_dtype, block_r, chunk, vmem_limit):
    """Two-pass path for very large H*W: chunked stats reduction + chunked apply."""
    r, hw = x2.shape
    n_i = _ceil_div(r, block_r)
    n_k = _ceil_div(hw, chunk)

    mean, inv_std = pl.pallas_call(
        functools.partial(_stats_kernel, hw=hw),
        out_shape=(
            jax.ShapeDtypeStruct((r, 1), jnp.float32),
            jax.ShapeDtypeStruct((r, 1), jnp.float32),
        ),
        grid_spec=pltpu.PrefetchScalarGridSpec(
            num_scalar_prefetch=0,
            grid=(n_i, n_k),
            in_specs=[pl.BlockSpec((block_r, chunk), lambda i, k: (i, k))],
            out_specs=[
                pl.BlockSpec((block_r, 1), lambda i, k: (i, 0)),
                pl.BlockSpec((block_r, 1), lambda i, k: (i, 0)),
            ],
            scratch_shapes=[
                pltpu.VMEM((block_r, 1), jnp.float32),
                pltpu.VMEM((block_r, 1), jnp.float32),
            ],
        ),
        compiler_params=pltpu.CompilerParams(
            dimension_semantics=("parallel", "arbitrary"),
            vmem_limit_bytes=vmem_limit,
        ),
    )(x2)

    # Tiny (r, 1) ops in the wrapper; fold everything into one (scale, shift) pair.
    scale = inv_std * sstd2
    shift = smean2 - mean * scale
    cs = jnp.concatenate([scale, shift], axis=1)  # (r, 2)

    return pl.pallas_call(
        _apply_kernel,
        out_shape=jax.ShapeDtypeStruct((r, hw), out_dtype),
        grid_spec=pltpu.PrefetchScalarGridSpec(
            num_scalar_prefetch=0,
            grid=(n_i, n_k),
            in_specs=[
                pl.BlockSpec((block_r, chunk), lambda i, k: (i, k)),
                pl.BlockSpec((block_r, 2), lambda i, k: (i, 0)),
            ],
            out_specs=pl.BlockSpec((block_r, chunk), lambda i, k: (i, k)),
        ),
        compiler_params=pltpu.CompilerParams(
            dimension_semantics=("parallel", "parallel"),
            vmem_limit_bytes=vmem_limit,
        ),
    )(x2, cs)


# ----------------------------------------------------------------------------
# Public entry point (matches the PyTorch AdaIN.forward)
# ----------------------------------------------------------------------------
def adain(content, style_std, style_mean):
    """content: (N, C, H, W); style_std, style_mean: (N, C, 1, 1) -> (N, C, H, W)."""
    assert content.shape[:2] == style_std.shape[:2] and \
        content.shape[:2] == style_mean.shape[:2]
    n, c, h, w = content.shape
    r, hw = n * c, h * w

    if hw < 2:
        # torch's unbiased var over a single spatial element is degenerate (NaN);
        # keep exact reference semantics for this corner case.
        return adain_reference(content, style_std, style_mean).astype(content.dtype)

    itemsize = jnp.dtype(content.dtype).itemsize
    sub = _sublane(content.dtype)
    vmem_limit, tile_budget = _vmem_plan()

    x2 = content.reshape(r, hw)                              # native dtype, no HBM cast
    sstd2 = style_std.reshape(r, 1).astype(jnp.float32)
    smean2 = style_mean.reshape(r, 1).astype(jnp.float32)

    if sub * hw * itemsize <= tile_budget:
        # Fast path: whole spatial row in one tile -> single read + single write.
        block_r = _pick_block_r(r, hw, itemsize, sub, tile_budget)
        style2 = jnp.concatenate([sstd2, smean2], axis=1)    # (r, 2): one DMA per step
        out2 = _adain_single(x2, style2, content.dtype, block_r, vmem_limit)
    else:
        # Huge H*W: chunked stats + apply keep VMEM bounded on every generation.
        block_r, chunk = _pick_chunk(hw, itemsize, sub, tile_budget)
        out2 = _adain_chunked(x2, sstd2, smean2, content.dtype, block_r, chunk, vmem_limit)

    return out2.reshape(n, c, h, w)


def adain_reference(content, style_std, style_mean):
    """Plain-JAX reference matching the PyTorch module."""
    n, c, h, w = content.shape
    feat = content.reshape(n, c, -1).astype(jnp.float32)
    mean = feat.mean(axis=2).reshape(n, c, 1, 1)
    var = feat.var(axis=2, ddof=1).reshape(n, c, 1, 1) + EPS  # unbiased, like torch
    std = jnp.sqrt(var)
    normalized = (content.astype(jnp.float32) - mean) / std
    return normalized * style_std.astype(jnp.float32) + style_mean.astype(jnp.float32)


if __name__ == "__main__":
    key = jax.random.PRNGKey(0)
    k1, k2, k3 = jax.random.split(key, 3)

    N, C, H, W = 2, 4, 16, 16
    content = jax.random.normal(k1, (N, C, H, W), dtype=jnp.float32)
    style_std = jax.random.uniform(k2, (N, C, 1, 1), dtype=jnp.float32, minval=0.5, maxval=1.5)
    style_mean = jax.random.normal(k3, (N, C, 1, 1), dtype=jnp.float32)

    ref = adain_reference(content, style_std, style_mean)

    # Fast (full-row) path.
    out = jax.block_until_ready(adain(content, style_std, style_mean))
    assert out.shape == (N, C, H, W)
    assert jnp.allclose(out, ref.astype(out.dtype), atol=1e-4, rtol=1e-4), \
        "single-tile path mismatch vs reference"

    # Also exercise the chunked-HW path (used for very large H*W) on the same data.
    r, hw = N * C, H * W
    out_chunked = jax.block_until_ready(
        _adain_chunked(
            content.reshape(r, hw),
            style_std.reshape(r, 1).astype(jnp.float32),
            style_mean.reshape(r, 1).astype(jnp.float32),
            content.dtype,
            block_r=8,
            chunk=128,
            vmem_limit=48 * 1024 * 1024,
        )
    ).reshape(N, C, H, W)
    assert jnp.allclose(out_chunked, ref.astype(out_chunked.dtype), atol=1e-4, rtol=1e-4), \
        "chunked path mismatch vs reference"

    print("KERNEL_OK")
</pallas_src>

<mosaic_0001>
module attributes {stable_mosaic.version = 11 : i64} {
  func.func @_adain_row_kernel(%arg0: i32, %arg1: memref<8x256xf32, #tpu.memory_space<vmem>>, %arg2: memref<8x2xf32, #tpu.memory_space<vmem>>, %arg3: memref<8x256xf32, #tpu.memory_space<vmem>>) attributes {dimension_semantics = [#tpu.dimension_semantics<parallel>], iteration_bounds = array<i64: 1>, scalar_prefetch = 0 : i64, scratch_operands = 0 : i64, tpu.core_type = #tpu.core_type<tc>, window_params = [{transform_indices = @transform_0, window_bounds = array<i64: 8, 256>}, {transform_indices = @transform_1, window_bounds = array<i64: 8, 2>}, {transform_indices = @transform_2, window_bounds = array<i64: 8, 256>}]} {
    %c0 = arith.constant 0 : index
    %c0_0 = arith.constant 0 : index
    %0 = vector.load %arg1[%c0, %c0_0] : memref<8x256xf32, #tpu.memory_space<vmem>>, vector<8x256xf32>
    %cst = arith.constant dense<0.000000e+00> : vector<8xf32>
    %1 = vector.multi_reduction <add>, %0, %cst [1] : vector<8x256xf32> to vector<8xf32>
    %2 = vector.shape_cast %1 : vector<8xf32> to vector<8x1xf32>
    %3 = arith.mulf %0, %0 : vector<8x256xf32>
    %cst_1 = arith.constant dense<0.000000e+00> : vector<8xf32>
    %4 = vector.multi_reduction <add>, %3, %cst_1 [1] : vector<8x256xf32> to vector<8xf32>
    %5 = vector.shape_cast %4 : vector<8xf32> to vector<8x1xf32>
    %cst_2 = arith.constant 3.906250e-03 : f32
    %6 = vector.broadcast %cst_2 : f32 to vector<8x1xf32>
    %7 = arith.mulf %2, %6 : vector<8x1xf32>
    %8 = arith.mulf %2, %7 : vector<8x1xf32>
    %9 = arith.subf %5, %8 : vector<8x1xf32>
    %cst_3 = arith.constant 0.000000e+00 : f32
    %10 = vector.broadcast %cst_3 : f32 to vector<8x1xf32>
    %11 = arith.maximumf %9, %10 : vector<8x1xf32>
    %cst_4 = arith.constant 0.00392156886 : f32
    %12 = vector.broadcast %cst_4 : f32 to vector<8x1xf32>
    %13 = arith.mulf %11, %12 : vector<8x1xf32>
    %cst_5 = arith.constant 9.99999974E-6 : f32
    %14 = vector.broadcast %cst_5 : f32 to vector<8x1xf32>
    %15 = arith.addf %13, %14 : vector<8x1xf32>
    %16 = math.rsqrt %15 : vector<8x1xf32>
    %c0_6 = arith.constant 0 : index
    %c0_7 = arith.constant 0 : index
    %17 = vector.load %arg2[%c0_6, %c0_7] : memref<8x2xf32, #tpu.memory_space<vmem>>, vector<8x2xf32>
    %18 = vector.extract_strided_slice %17 {offsets = [0, 0], sizes = [8, 1], strides = [1, 1]} : vector<8x2xf32> to vector<8x1xf32>
    %19 = arith.mulf %16, %18 : vector<8x1xf32>
    %20 = vector.extract_strided_slice %17 {offsets = [0, 1], sizes = [8, 1], strides = [1, 1]} : vector<8x2xf32> to vector<8x1xf32>
    %21 = arith.mulf %7, %19 : vector<8x1xf32>
    %22 = arith.subf %20, %21 : vector<8x1xf32>
    %23 = vector.broadcast %19 : vector<8x1xf32> to vector<8x256xf32>
    %24 = arith.mulf %0, %23 : vector<8x256xf32>
    %25 = vector.broadcast %22 : vector<8x1xf32> to vector<8x256xf32>
    %26 = arith.addf %24, %25 : vector<8x256xf32>
    %c0_8 = arith.constant 0 : index
    %c0_9 = arith.constant 0 : index
    %27 = vector.load %arg3[%c0_8, %c0_9] : memref<8x256xf32, #tpu.memory_space<vmem>>, vector<8x256xf32>
    tpu.vector_store %arg3[%c0_8, %c0_9], %26 {strides = array<i32>} : memref<8x256xf32, #tpu.memory_space<vmem>>, vector<8x256xf32>,
    return
  }
  func.func @transform_0(%arg0: i32) -> (i32, i32) {
    %c0_i32 = arith.constant 0 : i32
    %c0_i32_0 = arith.constant 0 : i32
    return %arg0, %c0_i32 : i32, i32
  }
  func.func @transform_1(%arg0: i32) -> (i32, i32) {
    %c0_i32 = arith.constant 0 : i32
    %c0_i32_0 = arith.constant 0 : i32
    return %arg0, %c0_i32 : i32, i32
  }
  func.func @transform_2(%arg0: i32) -> (i32, i32) {
    %c0_i32 = arith.constant 0 : i32
    %c0_i32_0 = arith.constant 0 : i32
    return %arg0, %c0_i32 : i32, i32
  }
}

</mosaic_0001>

<bundles_post_ra>
// kernel: tpu_custom_call.1
= control target key start
LH: loop header
LB: loop body
LE: loop exit
PB: predicated region body
PF: predicated region fallthrough
CT: control target
= control target key end

     0   :  { %7 = vsyncpa [#allocation3], 0  ;;  %s184_s0 = inlined_call_operand.hbm [shape: f32[8,256], index: 0, kind: input, shape index: {}]   ;;  %s185_s1 = inlined_call_operand.vmem [shape: f32[8,2], index: 1, kind: input, shape index: {}]   ;;  %s186_s2 = inlined_call_operand.hbm [shape: f32[8,256], index: 2, kind: output, shape index: {}]  }
   0x1   :  { %8 = vsyncpa [#allocation4], 0  ;;  %s14_s11 = sshll.u32 %s184_s0, 4  ;;  %s155_s12 = smov [#allocation2]   ;;  %s15_s11 = int_to_ptr.hbm [resolvable:$true] %s14_s11 }
   0x2   :  { %s16_s13 = sshll.u32 %s155_s12, 4  ;;  %s17_s13 = int_to_ptr.vmem [resolvable:$true] %s16_s13 }
   0x3   :  { %19 = dma.hbm_to_vmem [thread:$0]  %s15_s11, 256, %s17_s13, [#allocation3]  }
   0x4   :  { %151 = dma.done.wait [#allocation3], 256  }
   0x5   :  { %152 = vsyncadd [#allocation3], 4294967040  ;;  %v26_v0 = vld [vmem:[#allocation2] sm:$0xff]  ;;  %v27_v1 = vld [vmem:[#allocation2 + $0x8] sm:$0xff]  ;;  %v156_v10 = vmov 0   ;;  %s157_s15 = smov 1  }
   0x6   :  { %v28_v2 = vadd.f32 %v27_v1, %v26_v0  ;;  %v31_v3 = vmul.f32 %v26_v0, %v26_v0  ;;  %v32_v4 = vmul.f32 %v27_v1, %v27_v1  ;;  %98 = vset.pattern.permute.xlu1 %v156_v10  ;;  %v52_v21 = vld [vmem:[%s185_s1] sm:$0xff]  ;;  %v158_v25 = vmov 1   ;;  %s159_s16 = smov [#allocation5]   ;;  %s83_s19 = sshll.u32 %s186_s2, 4  ;;  %s84_s19 = int_to_ptr.hbm [resolvable:$true] %s83_s19 }
   0x7   :  { %99 = vset.pattern.permute.xlu2 %v158_v25  ;;  %100 = vset.pattern.permute.xlu0 %v158_v25  ;;  %s81_s17 = sshll.u32 %s159_s16, 4  ;;  %s82_s17 = int_to_ptr.vmem [resolvable:$true] %s81_s17 }
   0x8   :  { %29 = vadd.xlane.f32.xlu0 %v28_v2  ;;  %v33_v5 = vadd.f32 %v32_v4, %v31_v3 }
  0x10   :  { %34 = vadd.xlane.f32.xlu0 %v33_v5 }
  0x7b   :  { %v30_v6 = vpop.xlane.xlu0 %29 }
  0x7c   :  { %v36_v7 = vmul.f32 0.00390625, %v30_v6 }
  0x7e   :  { %v37_v8 = vmul.f32 %v36_v7, %v30_v6 }
  0x83   :  { %v35_v9 = vpop.xlane.xlu0 %34 }
  0x84   :  { %v38_v11 = vsub.f32 %v35_v9, %v37_v8 }
  0x86   :  { %v39_v12 = vmax.f32 %v38_v11, 0.0 }
  0x88   :  { %v40_v13 = vmul.f32 0.003921569, %v39_v12 }
  0x8a   :  { %v41_v14 = vadd.f32 1e-05, %v40_v13 }
  0x8c   :  { %101 = vrsqrt.f32 %v41_v14  ;;  %vm48_vm1 = vweird.f32 %v41_v14 }
  0x92   :  { %v102_v15 = vpop.eup %101 }
  0x93   :  { %v43_v16 = vmul.f32 %v102_v15, %v41_v14  ;;  %vm49_vm0 = vweird.f32 %v102_v15 }
  0x94   :  { %vm50_vm2 = vmor %vm48_vm1, %vm49_vm0 }
  0x95   :  { %v44_v17 = vmul.f32 %v102_v15, %v43_v16 }
  0x97   :  { %v45_v18 = vmul.f32 0.5, %v44_v17 }
  0x99   :  { %v46_v19 = vsub.f32 1.5, %v45_v18 }
  0x9b   :  { %v47_v20 = vmul.f32 %v102_v15, %v46_v19 }
  0x9d   :  { %v51_v22 = vsel %vm50_vm2, %v102_v15, %v47_v20 }
  0x9e   :  { %v53_v23 = vmul.f32 %v52_v21, %v51_v22 }
  0xa0   :  { %v54_v24 = vmul.f32 %v53_v23, %v36_v7 }
  0xa2   :  { %56 = vrot.lane.b32.xlu1 %v54_v24, %s157_s15 }
  0xaa   :  { %62 = vperm.xlu1 %98, %v53_v23  }
 0x114   :  { %v57_v26 = vpop.permute.xlu1 %56 }
 0x115   :  { %v59_v27 = vsub.f32 %v52_v21, %v57_v26 }
 0x117   :  { %69 = vperm.xlu2 %99, %v59_v27  }
 0x11c   :  { %v63_v28 = vpop.permute.xlu1 %62 }
 0x11d   :  { %v65_v29 = vmul.f32 %v63_v28, %v26_v0  ;;  %v66_v30 = vmul.f32 %v63_v28, %v27_v1 }
 0x171   :  { %v70_v31 = vpop.permute.xlu2 %69 }
 0x172   :  { %v72_v32 = vadd.f32 %v70_v31, %v65_v29  ;;  %v73_v33 = vadd.f32 %v70_v31, %v66_v30 }
 0x174   :  { %74 = vst [vmem:[#allocation5] sm:$0xff] %v72_v32 }
 0x175   :  { %75 = vst [vmem:[#allocation5 + $0x8] sm:$0xff] %v73_v33 }
 0x176   :  { %86 = dma.vmem_to_hbm [thread:$0]  %s82_s17, 256, %s84_s19, [#allocation4]  }
 0x177   :  { %153 = dma.done.wait [#allocation4], 256  }
 0x178   :  { %154 = vsyncadd [#allocation4], 4294967040 }
 0x179   :  { %91 = vsyncpa [#allocation3], 1 }
 0x17a   :  { %92 = vsyncpa [#allocation4], 1 }

</bundles_post_ra>
